<compile_context>
chip_gen: v7x
topology: tpu7x:2x2x1
jax: 0.10.0
libtpu: 0.0.40
codegen_flags: <defaults>
</compile_context>

<pallas_src>
import jax
import jax.numpy as jnp
from jax.experimental import pallas as pl
from jax.experimental.pallas import tpu as pltpu

_LANE = 128
_LANE_CAP = 8192                       # max lanes per block (64 * 128)
_TARGET_BLOCK_BYTES = 3 * 1024 * 1024  # ~3 MiB per buffer (v5e-safe footprint)
_VMEM_LIMIT_BYTES = 32 * 1024 * 1024   # explicit scoped-VMEM limit (all gens)


def _copy_kernel(x_ref, o_ref):
    # Pure tiled copy: load the current block and store it to the output.
    o_ref[...] = x_ref[...]


def _sublane_pack(dtype):
    # Native sublane packing: f32 -> 8, bf16/f16 -> 16, int8/fp8 -> 32.
    return {4: 8, 2: 16, 1: 32}.get(jnp.dtype(dtype).itemsize, 8)


def _largest_divisor_at_most(n, cap):
    cap = max(1, min(cap, n))
    for d in range(cap, 0, -1):
        if n % d == 0:
            return d
    return 1


def _largest_pack_multiple_divisor(n, cap, pack):
    cap = min(cap, n)
    start = (cap // pack) * pack
    for d in range(start, 0, -pack):
        if n % d == 0:
            return d
    return None


def _plan_layout(n, itemsize, pack):
    """Pick (R, C, tile_rows) with R*C == n (no padding) and legal blocks.

    Returns None if no pad-free tiling fits the per-buffer VMEM budget.
    """
    max_block_elems = max(1, _TARGET_BLOCK_BYTES // itemsize)
    if n % _LANE == 0:
        # Lane width: largest multiple of 128 dividing n, capped at 8192 lanes.
        c_mult = _largest_divisor_at_most(n // _LANE, _LANE_CAP // _LANE)
        C = _LANE * c_mult
        R = n // C
        cap_rows = max(1, max_block_elems // C)
        # Prefer >= 2 grid steps so a "parallel" grid can shard across the
        # two TensorCores on v7x.
        if R >= 2 * pack:
            tr = _largest_pack_multiple_divisor(R, min(cap_rows, R // 2), pack)
            if tr is not None:
                return R, C, tr
        tr = _largest_pack_multiple_divisor(R, cap_rows, pack)
        if tr is not None:
            return R, C, tr
        # No sublane-aligned divisor of R: one full-row block (legal: block
        # dim == full array dim) if the sublane-padded tile fits the budget.
        r_pad = -(-R // pack) * pack
        if r_pad * C * itemsize <= _TARGET_BLOCK_BYTES:
            return R, C, R
        return None
    # Not lane-aligned: a single full-extent (1, n) block if small enough.
    # VMEM footprint ~ pack sublanes x lane-padded n.
    n_lane_pad = -(-n // _LANE) * _LANE
    if pack * n_lane_pad * itemsize <= _TARGET_BLOCK_BYTES:
        return 1, n, 1
    return None


def _pallas_copy_2d(x2, tile_rows):
    """Tiled HBM->VMEM->HBM copy; blocks span the full lane axis."""
    R, C = x2.shape
    itemsize = jnp.dtype(x2.dtype).itemsize
    return pl.pallas_call(
        _copy_kernel,
        out_shape=jax.ShapeDtypeStruct((R, C), x2.dtype),
        grid=(R // tile_rows,),
        in_specs=[pl.BlockSpec((tile_rows, C), lambda i: (i, 0))],
        out_specs=pl.BlockSpec((tile_rows, C), lambda i: (i, 0)),
        cost_estimate=pl.CostEstimate(
            flops=0, transcendentals=0, bytes_accessed=2 * R * C * itemsize),
        compiler_params=pltpu.CompilerParams(
            dimension_semantics=("parallel",),
            vmem_limit_bytes=_VMEM_LIMIT_BYTES),
    )(x2)


def pallas_identity_copy(x):
    """Materialize a fresh copy of x with a tiled Pallas copy kernel."""
    if x.size == 0:
        return x
    n = x.size
    itemsize = jnp.dtype(x.dtype).itemsize
    pack = _sublane_pack(x.dtype)
    plan = _plan_layout(n, itemsize, pack)
    if plan is None:
        # TODO(synk): pathological shapes (large and not 128-aligned) have no
        # pad-free tiling; fall back to the true identity (semantics unchanged).
        return x
    R, C, tile_rows = plan
    out = _pallas_copy_2d(x.reshape(R, C), tile_rows)  # reshape is free under jit
    return out.reshape(x.shape)


@jax.jit
def _jit_pallas_identity_copy(x):
    return pallas_identity_copy(x)


class MeanEncoder:
    """Identity function (matches the PyTorch MeanEncoder module).

    `shape` is stored but unused, exactly as in the reference module.
    No parameters/weights exist in this module.

    By default the forward is the true identity (returns `x` — zero HBM
    traffic, the fastest possible implementation).  Set
    `use_pallas_copy=True` to run the Pallas copy kernel and return a fresh
    materialized copy instead.
    """

    def __init__(self, shape, use_pallas_copy=False):
        self.shape = shape
        self.use_pallas_copy = use_pallas_copy

    def __call__(self, x):
        if not self.use_pallas_copy:
            return x
        return _jit_pallas_identity_copy(x)


if __name__ == "__main__":
    key = jax.random.PRNGKey(0)

    # Default forward: true identity, no pallas_call, no HBM traffic.
    enc = MeanEncoder(shape=(4, 16, 16))
    x = jax.random.normal(key, (2, 4, 16, 16), dtype=jnp.float32)
    y = enc(x)
    assert y is x

    # Explicit Pallas copy path (exercised so the kernel compiles & runs).
    enc_k = MeanEncoder(shape=(4, 16, 16), use_pallas_copy=True)
    yk = jax.block_until_ready(enc_k(x))
    assert yk.shape == x.shape and yk.dtype == x.dtype
    assert bool(jnp.all(yk == x))

    # Sub-32-bit dtype (bf16) exercises dtype-aware sublane packing.
    xb = jax.random.normal(jax.random.PRNGKey(1), (2, 4, 16, 16),
                           dtype=jnp.bfloat16)
    yb = jax.block_until_ready(enc_k(xb))
    assert yb.shape == xb.shape and yb.dtype == xb.dtype
    assert bool(jnp.all(yb == xb))

    # Non-128-aligned shape: single full-extent block, still no padding ops.
    xo = jax.random.normal(jax.random.PRNGKey(2), (3, 5, 7), dtype=jnp.float32)
    yo = jax.block_until_ready(enc_k(xo))
    assert yo.shape == xo.shape and yo.dtype == xo.dtype
    assert bool(jnp.all(yo == xo))

    print("KERNEL_OK")
</pallas_src>

<mosaic_0001>
module attributes {stable_mosaic.version = 11 : i64} {
  func.func @_copy_kernel(%arg0: i32, %arg1: memref<1x2048xf32, #tpu.memory_space<vmem>>, %arg2: memref<1x2048xf32, #tpu.memory_space<vmem>>) attributes {dimension_semantics = [#tpu.dimension_semantics<parallel>], iteration_bounds = array<i64: 1>, scalar_prefetch = 0 : i64, scratch_operands = 0 : i64, tpu.core_type = #tpu.core_type<tc>, window_params = [{transform_indices = @transform_0, window_bounds = array<i64: 1, 2048>}, {transform_indices = @transform_1, window_bounds = array<i64: 1, 2048>}]} {
    %c0 = arith.constant 0 : index
    %c0_0 = arith.constant 0 : index
    %0 = vector.load %arg1[%c0, %c0_0] : memref<1x2048xf32, #tpu.memory_space<vmem>>, vector<1x2048xf32>
    %c0_1 = arith.constant 0 : index
    %c0_2 = arith.constant 0 : index
    %1 = vector.load %arg2[%c0_1, %c0_2] : memref<1x2048xf32, #tpu.memory_space<vmem>>, vector<1x2048xf32>
    tpu.vector_store %arg2[%c0_1, %c0_2], %0 {strides = array<i32>} : memref<1x2048xf32, #tpu.memory_space<vmem>>, vector<1x2048xf32>,
    return
  }
  func.func @transform_0(%arg0: i32) -> (i32, i32) {
    %c0_i32 = arith.constant 0 : i32
    %c0_i32_0 = arith.constant 0 : i32
    return %arg0, %c0_i32 : i32, i32
  }
  func.func @transform_1(%arg0: i32) -> (i32, i32) {
    %c0_i32 = arith.constant 0 : i32
    %c0_i32_0 = arith.constant 0 : i32
    return %arg0, %c0_i32 : i32, i32
  }
}

</mosaic_0001>

<bundles_post_ra>
// kernel: _jit_pallas_identity_copy.1
= control target key start
LH: loop header
LB: loop body
LE: loop exit
PB: predicated region body
PF: predicated region fallthrough
CT: control target
= control target key end

     0   :  { %s38_s0 = inlined_call_operand.vmem [shape: f32[1,2048], index: 0, kind: input, shape index: {}]   ;;  %s39_s1 = inlined_call_operand.vmem [shape: f32[1,2048], index: 1, kind: output, shape index: {}]  }
   0x1   :  { %v8_v0 = vld [vmem:[%s38_s0] sm:$0xff]  ;;  %v9_v1 = vld [vmem:[%s38_s0 + $0x8] sm:$0xff] }
   0x2   :  { %10 = vst [vmem:[%s39_s1] sm:$0xff] %v8_v0  ;;  %11 = vst [vmem:[%s39_s1 + $0x8] sm:$0xff] %v9_v1 }

</bundles_post_ra>
